<compile_context>
chip_gen: v5e
topology: v5e:2x2
jax: 0.10.0
libtpu: 0.0.40
codegen_flags: <defaults>
</compile_context>

<pallas_src>
import functools

import jax
import jax.numpy as jnp
from jax.experimental import pallas as pl
from jax.experimental.pallas import tpu as pltpu


def _round_up(x, m):
    return ((x + m - 1) // m) * m


def _pick_row_tile(h_out, w_out):
    """Largest divisor of h_out keeping the matmul M dim (tr * w_out) ~<= 128."""
    cap = max(1, 128 // max(w_out, 1))
    best = 1
    for t in range(1, h_out + 1):
        if h_out % t == 0 and t <= cap:
            best = t
    return best


def _basic_conv2d_kernel(x_ref, w_ref, scale_ref, shift_ref, o_ref, *,
                         kh, kw, dilation, tr, w_out):
    """One (batch, row-strip) per grid step. Conv (stride=1) + folded BN + ReLU."""
    r = pl.program_id(1)
    c_in_p = x_ref.shape[-1]
    c_out_p = o_ref.shape[-1]

    row0 = pl.multiple_of(r * tr, tr)          # first input row of this strip
    m = tr * w_out                             # matmul M dim for this strip

    acc = jnp.zeros((m, c_out_p), jnp.float32)
    # Static tap loop: each tap is one MXU matmul with f32 accumulation.
    # TODO(synk): a single im2col matmul (K = kh*kw*c_in) would cut MXU pushes
    # kh*kw-fold; kept as per-tap matmuls to avoid an unaligned lane-dim concat.
    for i in range(kh):
        r_start = row0 + i * dilation
        for j in range(kw):
            tap = x_ref[0, pl.ds(r_start, tr),
                        j * dilation:j * dilation + w_out, :]
            acc += jnp.dot(tap.reshape(m, c_in_p), w_ref[i, j],
                           preferred_element_type=jnp.float32)

    # Fused BatchNorm (pre-folded scale/shift, f32) + ReLU; lane-dense (128) store.
    y = jnp.maximum(acc * scale_ref[0] + shift_ref[0], 0.0)
    o_ref[0] = y.reshape(tr, w_out, c_out_p).astype(o_ref.dtype)


def basic_conv2d(x_nchw, weight_oihw, gamma, beta, running_mean, running_var,
                 *, stride=1, padding=0, dilation=1, eps=1e-5,
                 compute_dtype=jnp.bfloat16):
    """Pallas-backed BasicConv2d forward. Input/output are NCHW like PyTorch."""
    # TODO(synk): stride > 1 would need strided in-kernel row/col gathers; only
    # the module default stride == 1 is implemented.
    assert stride == 1, "only stride=1 supported"

    n, c_in, h, w = x_nchw.shape
    c_out, c_in_w, kh, kw = weight_oihw.shape
    assert c_in_w == c_in
    h_out = h + 2 * padding - dilation * (kh - 1)
    w_out = w + 2 * padding - dilation * (kw - 1)
    assert h_out > 0 and w_out > 0

    LANES, SUBLANES = 128, 8
    c_out_p = _round_up(c_out, LANES)          # lane-dense output / matmul N
    c_in_p = _round_up(c_in, SUBLANES)         # sublane-aligned contraction
    out_dtype = x_nchw.dtype

    # Layout: NCHW -> NHWC, then one pad pass covering spatial halo + channel pad.
    x = jnp.transpose(x_nchw, (0, 2, 3, 1)).astype(compute_dtype)
    x = jnp.pad(x, ((0, 0), (padding, padding), (padding, padding),
                    (0, c_in_p - c_in)))

    # Weight: OIHW -> (KH, KW, Cin_p, Cout_p), zero-padded channels.
    w_hwio = jnp.transpose(weight_oihw, (2, 3, 1, 0)).astype(compute_dtype)
    w_hwio = jnp.pad(w_hwio, ((0, 0), (0, 0),
                              (0, c_in_p - c_in), (0, c_out_p - c_out)))

    # Fold BN (inference) into per-channel scale/shift; padded channels -> 0.
    inv_std = jax.lax.rsqrt(running_var.astype(jnp.float32) + eps)
    scale = gamma.astype(jnp.float32) * inv_std
    shift = beta.astype(jnp.float32) - running_mean.astype(jnp.float32) * scale
    scale = jnp.pad(scale, (0, c_out_p - c_out)).reshape(1, c_out_p)
    shift = jnp.pad(shift, (0, c_out_p - c_out)).reshape(1, c_out_p)

    hp, wp = x.shape[1], x.shape[2]
    tr = _pick_row_tile(h_out, w_out)
    n_strips = h_out // tr

    kernel = functools.partial(_basic_conv2d_kernel, kh=kh, kw=kw,
                               dilation=dilation, tr=tr, w_out=w_out)

    flops = 2 * n * h_out * w_out * kh * kw * c_in_p * c_out_p
    bytes_accessed = int(x.size * x.dtype.itemsize
                         + w_hwio.size * w_hwio.dtype.itemsize
                         + (scale.size + shift.size) * 4
                         + n * h_out * w_out * c_out_p
                         * jnp.dtype(out_dtype).itemsize)

    out_nhwc = pl.pallas_call(
        kernel,
        out_shape=jax.ShapeDtypeStruct((n, h_out, w_out, c_out_p), out_dtype),
        grid=(n, n_strips),
        in_specs=[
            # Full padded image per batch element; constant across the row-strip
            # axis so it is DMA'd only when the batch index changes.
            # TODO(synk): for very large images, tile the input rows too (halo-
            # aware index_map or manual DMA) to bound VMEM on v7x (64 MiB).
            pl.BlockSpec((1, hp, wp, c_in_p), lambda b, r: (b, 0, 0, 0)),
            pl.BlockSpec((kh, kw, c_in_p, c_out_p), lambda b, r: (0, 0, 0, 0)),
            pl.BlockSpec((1, c_out_p), lambda b, r: (0, 0)),
            pl.BlockSpec((1, c_out_p), lambda b, r: (0, 0)),
        ],
        out_specs=pl.BlockSpec((1, tr, w_out, c_out_p),
                               lambda b, r: (b, r, 0, 0)),
        compiler_params=pltpu.CompilerParams(
            dimension_semantics=("parallel", "parallel")),
        cost_estimate=pl.CostEstimate(flops=flops, transcendentals=0,
                                      bytes_accessed=bytes_accessed),
    )(x, w_hwio, scale, shift)

    out = out_nhwc[..., :c_out]                       # drop padded channels
    return jnp.transpose(out, (0, 3, 1, 2))           # back to NCHW


def _reference(x_nchw, weight_oihw, gamma, beta, running_mean, running_var,
               *, padding, dilation, eps=1e-5):
    y = jax.lax.conv_general_dilated(
        x_nchw, weight_oihw,
        window_strides=(1, 1),
        padding=[(padding, padding), (padding, padding)],
        rhs_dilation=(dilation, dilation),
        dimension_numbers=("NCHW", "OIHW", "NCHW"))
    rm = running_mean[None, :, None, None]
    rv = running_var[None, :, None, None]
    g = gamma[None, :, None, None]
    b = beta[None, :, None, None]
    y = (y - rm) / jnp.sqrt(rv + eps) * g + b
    return jnp.maximum(y, 0.0)


if __name__ == "__main__":
    key = jax.random.PRNGKey(0)
    k_x, k_w, k_g, k_b, k_m, k_v = jax.random.split(key, 6)

    # Module config: BasicConv2d(in_planes=4, out_planes=8, kernel_size=3, padding=1)
    N, C_IN, H, W = 2, 4, 16, 16
    C_OUT, KH, KW = 8, 3, 3
    PADDING, DILATION = 1, 1

    x = jax.random.normal(k_x, (N, C_IN, H, W), jnp.float32)
    weight = jax.random.normal(k_w, (C_OUT, C_IN, KH, KW), jnp.float32) * 0.1
    gamma = 0.5 + jax.random.uniform(k_g, (C_OUT,), jnp.float32)
    beta = jax.random.normal(k_b, (C_OUT,), jnp.float32) * 0.1
    running_mean = jax.random.normal(k_m, (C_OUT,), jnp.float32) * 0.1
    running_var = 0.5 + jax.random.uniform(k_v, (C_OUT,), jnp.float32)

    ref = _reference(x, weight, gamma, beta, running_mean, running_var,
                     padding=PADDING, dilation=DILATION)

    # f32 compute path: tight numerical check against the XLA reference.
    out_f32 = basic_conv2d(x, weight, gamma, beta, running_mean, running_var,
                           stride=1, padding=PADDING, dilation=DILATION,
                           compute_dtype=jnp.float32)
    out_f32 = jax.block_until_ready(out_f32)
    assert out_f32.shape == (N, C_OUT, H, W), out_f32.shape
    assert jnp.allclose(out_f32, ref, atol=1e-4, rtol=1e-4), \
        float(jnp.max(jnp.abs(out_f32 - ref)))

    # bf16 MXU path (perf default): looser tolerance for bf16 operand rounding.
    out_bf16 = basic_conv2d(x, weight, gamma, beta, running_mean, running_var,
                            stride=1, padding=PADDING, dilation=DILATION)
    out_bf16 = jax.block_until_ready(out_bf16)
    assert out_bf16.shape == (N, C_OUT, H, W), out_bf16.shape
    assert jnp.allclose(out_bf16, ref, atol=5e-2, rtol=5e-2), \
        float(jnp.max(jnp.abs(out_bf16 - ref)))

    print("KERNEL_OK")
</pallas_src>

<mosaic_0001>
module attributes {stable_mosaic.version = 11 : i64} {
  func.func @_basic_conv2d_kernel(%arg0: i32, %arg1: i32, %arg2: memref<1x18x18x8xf32, #tpu.memory_space<vmem>>, %arg3: memref<3x3x8x128xf32, #tpu.memory_space<vmem>>, %arg4: memref<1x128xf32, #tpu.memory_space<vmem>>, %arg5: memref<1x128xf32, #tpu.memory_space<vmem>>, %arg6: memref<1x8x16x128xf32, #tpu.memory_space<vmem>>) attributes {dimension_semantics = [#tpu.dimension_semantics<parallel>, #tpu.dimension_semantics<parallel>], iteration_bounds = array<i64: 2, 2>, scalar_prefetch = 0 : i64, scratch_operands = 0 : i64, tpu.core_type = #tpu.core_type<tc>, window_params = [{transform_indices = @transform_0, window_bounds = array<i64: 1, 18, 18, 8>}, {pipeline_mode = #tpu.pipeline_mode<synchronous>, transform_indices = @transform_1, window_bounds = array<i64: 3, 3, 8, 128>}, {pipeline_mode = #tpu.pipeline_mode<synchronous>, transform_indices = @transform_2, window_bounds = array<i64: 1, 128>}, {pipeline_mode = #tpu.pipeline_mode<synchronous>, transform_indices = @transform_3, window_bounds = array<i64: 1, 128>}, {transform_indices = @transform_4, window_bounds = array<i64: 1, 8, 16, 128>}]} {
    %c8_i32 = arith.constant 8 : i32
    %0 = arith.muli %arg1, %c8_i32 : i32
    %1 = tpu.assume_multiple %0, 8 : i32
    %cst = arith.constant 0.000000e+00 : f32
    %2 = vector.broadcast %cst : f32 to vector<128x128xf32>
    %c0_i32 = arith.constant 0 : i32
    %3 = arith.addi %1, %c0_i32 : i32
    %c0 = arith.constant 0 : index
    %4 = arith.index_cast %3 : i32 to index
    %c0_0 = arith.constant 0 : index
    %c0_1 = arith.constant 0 : index
    %5 = vector.load %arg2[%c0, %4, %c0_0, %c0_1] : memref<1x18x18x8xf32, #tpu.memory_space<vmem>>, vector<1x8x16x8xf32>
    %6 = vector.shape_cast %5 : vector<1x8x16x8xf32> to vector<8x16x8xf32>
    %7 = vector.shape_cast %6 : vector<8x16x8xf32> to vector<128x8xf32>
    %c0_2 = arith.constant 0 : index
    %c0_3 = arith.constant 0 : index
    %c0_4 = arith.constant 0 : index
    %c0_5 = arith.constant 0 : index
    %8 = vector.load %arg3[%c0_2, %c0_3, %c0_4, %c0_5] : memref<3x3x8x128xf32, #tpu.memory_space<vmem>>, vector<1x1x8x128xf32>
    %9 = vector.shape_cast %8 : vector<1x1x8x128xf32> to vector<8x128xf32>
    %cst_6 = arith.constant dense<0.000000e+00> : vector<128x128xf32>
    %10 = tpu.matmul %7, %9, %cst_6 {dimension_numbers = #tpu.dot_dimension_numbers<[1], [0], [0], [1], [0, 0, 1, 1], [], []>} : vector<128x8xf32>, vector<8x128xf32>, vector<128x128xf32> -> vector<128x128xf32>
    %11 = arith.addf %2, %10 : vector<128x128xf32>
    %c0_7 = arith.constant 0 : index
    %12 = arith.index_cast %3 : i32 to index
    %c1 = arith.constant 1 : index
    %c0_8 = arith.constant 0 : index
    %13 = vector.load %arg2[%c0_7, %12, %c1, %c0_8] : memref<1x18x18x8xf32, #tpu.memory_space<vmem>>, vector<1x8x16x8xf32>
    %14 = vector.shape_cast %13 : vector<1x8x16x8xf32> to vector<8x16x8xf32>
    %15 = vector.shape_cast %14 : vector<8x16x8xf32> to vector<128x8xf32>
    %c0_9 = arith.constant 0 : index
    %c1_10 = arith.constant 1 : index
    %c0_11 = arith.constant 0 : index
    %c0_12 = arith.constant 0 : index
    %16 = vector.load %arg3[%c0_9, %c1_10, %c0_11, %c0_12] : memref<3x3x8x128xf32, #tpu.memory_space<vmem>>, vector<1x1x8x128xf32>
    %17 = vector.shape_cast %16 : vector<1x1x8x128xf32> to vector<8x128xf32>
    %cst_13 = arith.constant dense<0.000000e+00> : vector<128x128xf32>
    %18 = tpu.matmul %15, %17, %cst_13 {dimension_numbers = #tpu.dot_dimension_numbers<[1], [0], [0], [1], [0, 0, 1, 1], [], []>} : vector<128x8xf32>, vector<8x128xf32>, vector<128x128xf32> -> vector<128x128xf32>
    %19 = arith.addf %11, %18 : vector<128x128xf32>
    %c0_14 = arith.constant 0 : index
    %20 = arith.index_cast %3 : i32 to index
    %c2 = arith.constant 2 : index
    %c0_15 = arith.constant 0 : index
    %21 = vector.load %arg2[%c0_14, %20, %c2, %c0_15] : memref<1x18x18x8xf32, #tpu.memory_space<vmem>>, vector<1x8x16x8xf32>
    %22 = vector.shape_cast %21 : vector<1x8x16x8xf32> to vector<8x16x8xf32>
    %23 = vector.shape_cast %22 : vector<8x16x8xf32> to vector<128x8xf32>
    %c0_16 = arith.constant 0 : index
    %c2_17 = arith.constant 2 : index
    %c0_18 = arith.constant 0 : index
    %c0_19 = arith.constant 0 : index
    %24 = vector.load %arg3[%c0_16, %c2_17, %c0_18, %c0_19] : memref<3x3x8x128xf32, #tpu.memory_space<vmem>>, vector<1x1x8x128xf32>
    %25 = vector.shape_cast %24 : vector<1x1x8x128xf32> to vector<8x128xf32>
    %cst_20 = arith.constant dense<0.000000e+00> : vector<128x128xf32>
    %26 = tpu.matmul %23, %25, %cst_20 {dimension_numbers = #tpu.dot_dimension_numbers<[1], [0], [0], [1], [0, 0, 1, 1], [], []>} : vector<128x8xf32>, vector<8x128xf32>, vector<128x128xf32> -> vector<128x128xf32>
    %27 = arith.addf %19, %26 : vector<128x128xf32>
    %c1_i32 = arith.constant 1 : i32
    %28 = arith.addi %1, %c1_i32 : i32
    %c0_21 = arith.constant 0 : index
    %29 = arith.index_cast %28 : i32 to index
    %c0_22 = arith.constant 0 : index
    %c0_23 = arith.constant 0 : index
    %30 = vector.load %arg2[%c0_21, %29, %c0_22, %c0_23] : memref<1x18x18x8xf32, #tpu.memory_space<vmem>>, vector<1x8x16x8xf32>
    %31 = vector.shape_cast %30 : vector<1x8x16x8xf32> to vector<8x16x8xf32>
    %32 = vector.shape_cast %31 : vector<8x16x8xf32> to vector<128x8xf32>
    %c1_24 = arith.constant 1 : index
    %c0_25 = arith.constant 0 : index
    %c0_26 = arith.constant 0 : index
    %c0_27 = arith.constant 0 : index
    %33 = vector.load %arg3[%c1_24, %c0_25, %c0_26, %c0_27] : memref<3x3x8x128xf32, #tpu.memory_space<vmem>>, vector<1x1x8x128xf32>
    %34 = vector.shape_cast %33 : vector<1x1x8x128xf32> to vector<8x128xf32>
    %cst_28 = arith.constant dense<0.000000e+00> : vector<128x128xf32>
    %35 = tpu.matmul %32, %34, %cst_28 {dimension_numbers = #tpu.dot_dimension_numbers<[1], [0], [0], [1], [0, 0, 1, 1], [], []>} : vector<128x8xf32>, vector<8x128xf32>, vector<128x128xf32> -> vector<128x128xf32>
    %36 = arith.addf %27, %35 : vector<128x128xf32>
    %c0_29 = arith.constant 0 : index
    %37 = arith.index_cast %28 : i32 to index
    %c1_30 = arith.constant 1 : index
    %c0_31 = arith.constant 0 : index
    %38 = vector.load %arg2[%c0_29, %37, %c1_30, %c0_31] : memref<1x18x18x8xf32, #tpu.memory_space<vmem>>, vector<1x8x16x8xf32>
    %39 = vector.shape_cast %38 : vector<1x8x16x8xf32> to vector<8x16x8xf32>
    %40 = vector.shape_cast %39 : vector<8x16x8xf32> to vector<128x8xf32>
    %c1_32 = arith.constant 1 : index
    %c1_33 = arith.constant 1 : index
    %c0_34 = arith.constant 0 : index
    %c0_35 = arith.constant 0 : index
    %41 = vector.load %arg3[%c1_32, %c1_33, %c0_34, %c0_35] : memref<3x3x8x128xf32, #tpu.memory_space<vmem>>, vector<1x1x8x128xf32>
    %42 = vector.shape_cast %41 : vector<1x1x8x128xf32> to vector<8x128xf32>
    %cst_36 = arith.constant dense<0.000000e+00> : vector<128x128xf32>
    %43 = tpu.matmul %40, %42, %cst_36 {dimension_numbers = #tpu.dot_dimension_numbers<[1], [0], [0], [1], [0, 0, 1, 1], [], []>} : vector<128x8xf32>, vector<8x128xf32>, vector<128x128xf32> -> vector<128x128xf32>
    %44 = arith.addf %36, %43 : vector<128x128xf32>
    %c0_37 = arith.constant 0 : index
    %45 = arith.index_cast %28 : i32 to index
    %c2_38 = arith.constant 2 : index
    %c0_39 = arith.constant 0 : index
    %46 = vector.load %arg2[%c0_37, %45, %c2_38, %c0_39] : memref<1x18x18x8xf32, #tpu.memory_space<vmem>>, vector<1x8x16x8xf32>
    %47 = vector.shape_cast %46 : vector<1x8x16x8xf32> to vector<8x16x8xf32>
    %48 = vector.shape_cast %47 : vector<8x16x8xf32> to vector<128x8xf32>
    %c1_40 = arith.constant 1 : index
    %c2_41 = arith.constant 2 : index
    %c0_42 = arith.constant 0 : index
    %c0_43 = arith.constant 0 : index
    %49 = vector.load %arg3[%c1_40, %c2_41, %c0_42, %c0_43] : memref<3x3x8x128xf32, #tpu.memory_space<vmem>>, vector<1x1x8x128xf32>
    %50 = vector.shape_cast %49 : vector<1x1x8x128xf32> to vector<8x128xf32>
    %cst_44 = arith.constant dense<0.000000e+00> : vector<128x128xf32>
    %51 = tpu.matmul %48, %50, %cst_44 {dimension_numbers = #tpu.dot_dimension_numbers<[1], [0], [0], [1], [0, 0, 1, 1], [], []>} : vector<128x8xf32>, vector<8x128xf32>, vector<128x128xf32> -> vector<128x128xf32>
    %52 = arith.addf %44, %51 : vector<128x128xf32>
    %c2_i32 = arith.constant 2 : i32
    %53 = arith.addi %1, %c2_i32 : i32
    %c0_45 = arith.constant 0 : index
    %54 = arith.index_cast %53 : i32 to index
    %c0_46 = arith.constant 0 : index
    %c0_47 = arith.constant 0 : index
    %55 = vector.load %arg2[%c0_45, %54, %c0_46, %c0_47] : memref<1x18x18x8xf32, #tpu.memory_space<vmem>>, vector<1x8x16x8xf32>
    %56 = vector.shape_cast %55 : vector<1x8x16x8xf32> to vector<8x16x8xf32>
    %57 = vector.shape_cast %56 : vector<8x16x8xf32> to vector<128x8xf32>
    %c2_48 = arith.constant 2 : index
    %c0_49 = arith.constant 0 : index
    %c0_50 = arith.constant 0 : index
    %c0_51 = arith.constant 0 : index
    %58 = vector.load %arg3[%c2_48, %c0_49, %c0_50, %c0_51] : memref<3x3x8x128xf32, #tpu.memory_space<vmem>>, vector<1x1x8x128xf32>
    %59 = vector.shape_cast %58 : vector<1x1x8x128xf32> to vector<8x128xf32>
    %cst_52 = arith.constant dense<0.000000e+00> : vector<128x128xf32>
    %60 = tpu.matmul %57, %59, %cst_52 {dimension_numbers = #tpu.dot_dimension_numbers<[1], [0], [0], [1], [0, 0, 1, 1], [], []>} : vector<128x8xf32>, vector<8x128xf32>, vector<128x128xf32> -> vector<128x128xf32>
    %61 = arith.addf %52, %60 : vector<128x128xf32>
    %c0_53 = arith.constant 0 : index
    %62 = arith.index_cast %53 : i32 to index
    %c1_54 = arith.constant 1 : index
    %c0_55 = arith.constant 0 : index
    %63 = vector.load %arg2[%c0_53, %62, %c1_54, %c0_55] : memref<1x18x18x8xf32, #tpu.memory_space<vmem>>, vector<1x8x16x8xf32>
    %64 = vector.shape_cast %63 : vector<1x8x16x8xf32> to vector<8x16x8xf32>
    %65 = vector.shape_cast %64 : vector<8x16x8xf32> to vector<128x8xf32>
    %c2_56 = arith.constant 2 : index
    %c1_57 = arith.constant 1 : index
    %c0_58 = arith.constant 0 : index
    %c0_59 = arith.constant 0 : index
    %66 = vector.load %arg3[%c2_56, %c1_57, %c0_58, %c0_59] : memref<3x3x8x128xf32, #tpu.memory_space<vmem>>, vector<1x1x8x128xf32>
    %67 = vector.shape_cast %66 : vector<1x1x8x128xf32> to vector<8x128xf32>
    %cst_60 = arith.constant dense<0.000000e+00> : vector<128x128xf32>
    %68 = tpu.matmul %65, %67, %cst_60 {dimension_numbers = #tpu.dot_dimension_numbers<[1], [0], [0], [1], [0, 0, 1, 1], [], []>} : vector<128x8xf32>, vector<8x128xf32>, vector<128x128xf32> -> vector<128x128xf32>
    %69 = arith.addf %61, %68 : vector<128x128xf32>
    %c0_61 = arith.constant 0 : index
    %70 = arith.index_cast %53 : i32 to index
    %c2_62 = arith.constant 2 : index
    %c0_63 = arith.constant 0 : index
    %71 = vector.load %arg2[%c0_61, %70, %c2_62, %c0_63] : memref<1x18x18x8xf32, #tpu.memory_space<vmem>>, vector<1x8x16x8xf32>
    %72 = vector.shape_cast %71 : vector<1x8x16x8xf32> to vector<8x16x8xf32>
    %73 = vector.shape_cast %72 : vector<8x16x8xf32> to vector<128x8xf32>
    %c2_64 = arith.constant 2 : index
    %c2_65 = arith.constant 2 : index
    %c0_66 = arith.constant 0 : index
    %c0_67 = arith.constant 0 : index
    %74 = vector.load %arg3[%c2_64, %c2_65, %c0_66, %c0_67] : memref<3x3x8x128xf32, #tpu.memory_space<vmem>>, vector<1x1x8x128xf32>
    %75 = vector.shape_cast %74 : vector<1x1x8x128xf32> to vector<8x128xf32>
    %cst_68 = arith.constant dense<0.000000e+00> : vector<128x128xf32>
    %76 = tpu.matmul %73, %75, %cst_68 {dimension_numbers = #tpu.dot_dimension_numbers<[1], [0], [0], [1], [0, 0, 1, 1], [], []>} : vector<128x8xf32>, vector<8x128xf32>, vector<128x128xf32> -> vector<128x128xf32>
    %77 = arith.addf %69, %76 : vector<128x128xf32>
    %c0_69 = arith.constant 0 : index
    %c0_70 = arith.constant 0 : index
    %78 = vector.load %arg4[%c0_69, %c0_70] : memref<1x128xf32, #tpu.memory_space<vmem>>, vector<1x128xf32>
    %79 = vector.shape_cast %78 : vector<1x128xf32> to vector<128xf32>
    %80 = vector.shape_cast %79 : vector<128xf32> to vector<1x128xf32>
    %81 = vector.broadcast %80 : vector<1x128xf32> to vector<128x128xf32>
    %82 = arith.mulf %77, %81 : vector<128x128xf32>
    %c0_71 = arith.constant 0 : index
    %c0_72 = arith.constant 0 : index
    %83 = vector.load %arg5[%c0_71, %c0_72] : memref<1x128xf32, #tpu.memory_space<vmem>>, vector<1x128xf32>
    %84 = vector.shape_cast %83 : vector<1x128xf32> to vector<128xf32>
    %85 = vector.shape_cast %84 : vector<128xf32> to vector<1x128xf32>
    %86 = vector.broadcast %85 : vector<1x128xf32> to vector<128x128xf32>
    %87 = arith.addf %82, %86 : vector<128x128xf32>
    %cst_73 = arith.constant 0.000000e+00 : f32
    %88 = vector.broadcast %cst_73 : f32 to vector<128x128xf32>
    %89 = arith.maximumf %87, %88 : vector<128x128xf32>
    %90 = vector.shape_cast %89 : vector<128x128xf32> to vector<8x16x128xf32>
    %c0_74 = arith.constant 0 : index
    %c0_75 = arith.constant 0 : index
    %c0_76 = arith.constant 0 : index
    %c0_77 = arith.constant 0 : index
    %91 = vector.load %arg6[%c0_74, %c0_75, %c0_76, %c0_77] : memref<1x8x16x128xf32, #tpu.memory_space<vmem>>, vector<1x8x16x128xf32>
    %92 = vector.shape_cast %91 : vector<1x8x16x128xf32> to vector<8x16x128xf32>
    %93 = vector.shape_cast %90 : vector<8x16x128xf32> to vector<1x8x16x128xf32>
    tpu.vector_store %arg6[%c0_74, %c0_75, %c0_76, %c0_77], %93 {strides = array<i32>} : memref<1x8x16x128xf32, #tpu.memory_space<vmem>>, vector<1x8x16x128xf32>,
    return
  }
  func.func @transform_0(%arg0: i32, %arg1: i32) -> (i32, i32, i32, i32) {
    %c0_i32 = arith.constant 0 : i32
    %c0_i32_0 = arith.constant 0 : i32
    %c0_i32_1 = arith.constant 0 : i32
    %c0_i32_2 = arith.constant 0 : i32
    return %arg0, %c0_i32, %c0_i32_0, %c0_i32_1 : i32, i32, i32, i32
  }
  func.func @transform_1(%arg0: i32, %arg1: i32) -> (i32, i32, i32, i32) {
    %c0_i32 = arith.constant 0 : i32
    %c0_i32_0 = arith.constant 0 : i32
    %c0_i32_1 = arith.constant 0 : i32
    %c0_i32_2 = arith.constant 0 : i32
    %c0_i32_3 = arith.constant 0 : i32
    return %c0_i32, %c0_i32_0, %c0_i32_1, %c0_i32_2 : i32, i32, i32, i32
  }
  func.func @transform_2(%arg0: i32, %arg1: i32) -> (i32, i32) {
    %c0_i32 = arith.constant 0 : i32
    %c0_i32_0 = arith.constant 0 : i32
    %c0_i32_1 = arith.constant 0 : i32
    return %c0_i32, %c0_i32_0 : i32, i32
  }
  func.func @transform_3(%arg0: i32, %arg1: i32) -> (i32, i32) {
    %c0_i32 = arith.constant 0 : i32
    %c0_i32_0 = arith.constant 0 : i32
    %c0_i32_1 = arith.constant 0 : i32
    return %c0_i32, %c0_i32_0 : i32, i32
  }
  func.func @transform_4(%arg0: i32, %arg1: i32) -> (i32, i32, i32, i32) {
    %c0_i32 = arith.constant 0 : i32
    %c0_i32_0 = arith.constant 0 : i32
    %c0_i32_1 = arith.constant 0 : i32
    return %arg0, %arg1, %c0_i32, %c0_i32_0 : i32, i32, i32, i32
  }
}

</mosaic_0001>

<bundles_post_ra>
// kernel: tpu_custom_call.1
= control target key start
LH: loop header
LB: loop body
LE: loop exit
PB: predicated region body
PF: predicated region fallthrough
CT: control target
= control target key end

     0   :  { %9 = vsyncpa [#allocation3], 0  ;;  %s2866_s0 = inlined_call_operand.vmem [shape: f32[2,18,18,8], index: 0, kind: input, shape index: {}]   ;;  %s2867_s1 = inlined_call_operand.vmem [shape: f32[3,3,8,128], index: 1, kind: input, shape index: {}]   ;;  %s2868_s2 = inlined_call_operand.vmem [shape: f32[1,128], index: 2, kind: input, shape index: {}]   ;;  %s2869_s3 = inlined_call_operand.vmem [shape: f32[1,128], index: 3, kind: input, shape index: {}]   ;;  %s2870_s4 = inlined_call_operand.hbm [shape: f32[2,16,16,128], index: 4, kind: output, shape index: {}]  }
   0x1   :  { %11 = vsyncpa [#allocation3 + $0x1], 0  ;;  %s2159_s15 = smov 0   ;;  %s2161_s16 = smov 0  }
   0x2   :  { %s2163_s17 = smov 0   ;;  %s2165_s18 = smov 0  }
   0x3   :  { %s2167_s19 = smov 0   ;;  %s2169_s20 = smov 0  }
   0x4   :  { %s2171_s21 = smov 0   ;;  %s2173_s22 = smov 0  }
   0x5 LB: > { %s1688_s23 = sadd.s32 4294967295, %s2130_s22   ;;  %s1689_s24 = sadd.s32 4294967294, %s2130_s22   ;;  %s2130_s22 = sphi %s2173_s22, %s17_s22   ;;  %s2126_s21 = sphi %s2171_s21, %s2888_s21   ;;  %s2122_s20 = sphi %s2169_s20, %s2887_s20   ;;  %s2118_s19 = sphi %s2167_s19, %s2886_s19   ;;  %s2114_s18 = sphi %s2165_s18, %s2885_s18   ;;  %s2110_s17 = sphi %s2163_s17, %s2884_s17   ;;  %s2106_s16 = sphi %s2161_s16, %s2883_s16   ;;  %s2102_s15 = sphi %s2159_s15, %s2882_s15  }
   0x6   : > { %s26_s25 = sadd.s32 1, %s2122_s20  ;;  %s29_s26 = sadd.s32 1, %s2126_s21 }
   0x7   : > { %p27_p0 = scmp.ge.s32.totalorder %s26_s25, 2  ;;  %p137_p1 = scmp.ne.s32.totalorder %s2110_s17, %s2106_s16 }
   0x8   : > { %p138_p2 = scmp.eq.s32.totalorder %s1688_s23, 3  ;;  %p143_p5 = scmp.ne.s32.totalorder %s2106_s16, %s2102_s15 }
   0x9   : > { %s2890_s25 = smov (%p27_p0, %s26_s25), 0  ;;  %s2892_s26 = smov (!%p27_p0, %s29_s26), %s2126_s21 }
   0xa   : > { %s123_s27 = ssub.s32 %s2122_s20, %s2890_s25  ;;  %p2210_p3 = por %p138_p2, %p137_p1 }
   0xb   : > { %p31_p4 = scmp.ge.s32.totalorder %s2892_s26, 2  ;;  %p144_p6 = scmp.eq.s32.totalorder %s1689_s24, 3 }
   0xc   : > { %p1692_p7 = scmp.ge.s32.totalorder %s2130_s22, 1  ;;  %p179_p9 = scmp.lt.s32.totalorder %s2130_s22, 5 }
   0xd   : > { %s2894_s26 = smov (%p31_p4, %s2892_s26), 0  ;;  %p2219_p8 = por %p144_p6, %p143_p5 }
   0xe   : > { %s122_s30 = ssub.s32 %s2126_s21, %s2894_s26  ;;  %s127_s5 = sadd.s32 1, %s2110_s17 }
   0xf   : > { %s124_s6 = sor.u32 %s123_s27, %s122_s30  ;;  %p180_p10 = pnand %p1692_p7, %p179_p9 }
  0x10   : > { %p125_p11 = scmp.eq.s32.totalorder %s124_s6, 0 }
  0x11   : > { %183 = sbr.rel (%p180_p10) target bundleno = 459 (0x1cb), region = 36 }
  0x12   : > { %s2228_s7 = scalar_select %p125_p11, %s2110_s17, %s127_s5  }
  0x16   : > { %v1697_v0 = vld [vmem:[%s2867_s1 + $0x8] sm:$0xff]  ;;  %p205_p12 = scmp.lt.s32.totalorder %s2118_s19, 1  ;;  %v1730_v1 = vld [vmem:[%s2867_s1 + $0x10] sm:$0xff]  ;;  %v1765_v2 = vld [vmem:[%s2867_s1 + $0x18] sm:$0xff]  ;;  %s1696_s5 = smul.u32 192, %s2114_s18  ;;  %vm249_vm0 = vcmask 64512  }
  0x17   : > { %1957 = vmatpush.msra.mxu1 %v1697_v0  ;;  %1958 = vmatpush.msra.mxu2 %v1697_v0  ;;  %v230_v3 = vld [vmem:[%s2867_s1] sm:$0xff]  ;;  %v1866_v9 = vld [vmem:[%s2867_s1 + $0x30] sm:$0xff]  ;;  %v1899_v12 = vld [vmem:[%s2867_s1 + $0x38] sm:$0xff]  ;;  %s202_s9 = sand.u32 1, %s2106_s16   ;;  %s1956_s14 = sshll.u32 %s2114_s18, 4 }
  0x18   : > { %s206_s24 = scalar_select %p205_p12, %s2118_s19, 1  ;;  %1959 = vmatpush.msra.mxu3 %v1697_v0  ;;  %v1798_v4 = vld [vmem:[%s2867_s1 + $0x20] sm:$0xff]  ;;  %313 = vmatpush.msra.mxu0 %v1697_v0  ;;  %v1831_v15 = vld [vmem:[%s2867_s1 + $0x28] sm:$0xff] }
  0x19   : > { %557 = vmatpush.msrb.mxu2 %v1730_v1  ;;  %426 = vmatpush.msrb.mxu1 %v230_v3  ;;  %v1932_v16 = vld [vmem:[%s2867_s1 + $0x40] sm:$0xff]  ;;  %s1693_s12 = sshll.u32 %s202_s9, 7  ;;  %s1952_s23 = sshll.u32 %s2118_s19, 5 }
  0x1a   : > { %707 = vmatpush.msrb.mxu3 %v1765_v2  ;;  %s1960_s6 = smul.u32 432, %s206_s24  ;;  %854 = vmatpush.msrb.mxu0 %v1798_v4  ;;  %s2758_s13 = scalar_lea.vmem [#allocation2], %s1693_s12 }
  0x1b   : > { %s1596_s24 = sadd.s32 %s1956_s14, %s1952_s23  ;;  %s1584_s8 = scalar_lea.sflag [#allocation3], %s202_s9 }
  0x1c   : > { %s209_s10 = scalar_lea.vmem %s2866_s0, %s1960_s6  ;;  %s1953_s27 = sshll.u32 %s1596_s24, 3 }
  0x1d   : > { %s2251_s11 = scalar_lea.vmem %s209_s10, %s1696_s5  ;;  %s1598_s30 = scalar_lea.hbm %s2870_s4, %s1953_s27 }
  0x1e   : > { %v2254_v5 = vld [vmem:[%s2251_s11 + $0x31] sm:$0xff]  ;;  %v2257_v6 = vld [vmem:[%s2251_s11 + $0x61] sm:$0xff]  ;;  %v2274_v10 = vld [vmem:[%s2251_s11 + $0x39] sm:$0xff]  ;;  %s1599_s5 = sshll.u32 %s2758_s13, 4  ;;  %s1601_s6 = sshll.u32 %s1598_s30, 4  ;;  %s1600_s5 = int_to_ptr.vmem [resolvable:$true] %s1599_s5  ;;  %s1602_s6 = int_to_ptr.hbm [resolvable:$true] %s1601_s6 }
  0x1f   : > { %v2260_v7 = vld [vmem:[%s2251_s11 + $0x91] sm:$0xff]  ;;  %1702 = vmatmul.msk.f32.vlgmr.msra.gmra.mxu1 %vm249_vm0, %v2254_v5  ;;  %1706 = vmatmul.msk.f32.vlgmr.msra.gmra.mxu2 %vm249_vm0, %v2257_v6  ;;  %v231_v8 = vld [vmem:[%s2251_s11 + $0x1] sm:$0xff]  ;;  %v2277_v11 = vld [vmem:[%s2251_s11 + $0x69] sm:$0xff]  ;;  %s2050_s10 = sshra.s32 %s1602_s6, 4  ;;  %s2056_s23 = scalar_lea.hbm %s2870_s4, 512  ;;  %s2051_s10 = int_to_ptr.hbm [resolvable:$true] %s2050_s10 }
  0x20   : > { %1710 = vmatmul.msk.f32.vlgmr.msra.gmra.mxu3 %vm249_vm0, %v2260_v7  ;;  %1698 = vmatmul.msk.f32.vlgmr.msra.gmra.mxu0 %vm249_vm0, %v231_v8  ;;  %v2283_v13 = vld [vmem:[%s2251_s11 + $0x99] sm:$0xff]  ;;  %v232_v14 = vld [vmem:[%s2251_s11 + $0x9] sm:$0xff]  ;;  %v2317_v21 = vld [vmem:[%s2251_s11 + $0x51] sm:$0xff]  ;;  %p2057_p2 = scmp.lt.s32.totalorder %s2051_s10, %s2870_s4 }
  0x21   : > { %1151 = vmatpush.msra.mxu2 %v1866_v9  ;;  %1298 = vmatpush.msra.mxu3 %v1899_v12  ;;  %v2300_v17 = vld [vmem:[%s2251_s11 + $0x49] sm:$0xff]  ;;  %v2303_v18 = vld [vmem:[%s2251_s11 + $0x79] sm:$0xff]  ;;  %v2320_v22 = vld [vmem:[%s2251_s11 + $0x81] sm:$0xff] }
  0x22   : > { %1001 = vmatpush.msra.mxu1 %v1831_v15  ;;  %1445 = vmatpush.msra.mxu0 %v1932_v16  ;;  %v2306_v19 = vld [vmem:[%s2251_s11 + $0xa9] sm:$0xff]  ;;  %v233_v20 = vld [vmem:[%s2251_s11 + $0x19] sm:$0xff]  ;;  %v2323_v23 = vld [vmem:[%s2251_s11 + $0xb1] sm:$0xff] }
  0x23   : > { %v234_v24 = vld [vmem:[%s2251_s11 + $0x21] sm:$0xff]  ;;  %v1749_v27 = vld [vmem:[%s2251_s11 + $0x18] sm:$0xff]  ;;  %v477_v29 = vld [vmem:[%s2251_s11 + $0xa] sm:$0xff] }
  0x24   : > { %v214_v25 = vld [vmem:[%s2251_s11] sm:$0xff]  ;;  %v215_v28 = vld [vmem:[%s2251_s11 + $0x8] sm:$0xff]  ;;  %v2351_v32 = vld [vmem:[%s2251_s11 + $0x30] sm:$0xff] }
  0x25   : > { %v476_v26 = vld [vmem:[%s2251_s11 + $0x2] sm:$0xff]  ;;  %v2348_v31 = vld [vmem:[%s2251_s11 + $0x1a] sm:$0xff]  ;;  %v2374_v35 = vld [vmem:[%s2251_s11 + $0x32] sm:$0xff] }
  0x26   : > { %v1750_v30 = vld [vmem:[%s2251_s11 + $0x20] sm:$0xff]  ;;  %v2364_v34 = vld [vmem:[%s2251_s11 + $0x38] sm:$0xff]  ;;  %v2377_v36 = vld [vmem:[%s2251_s11 + $0x48] sm:$0xff] }
  0x27   : > { %1703 = vmatmul.msk.f32.gmra.mxu1 %vm249_vm0, %v2274_v10  ;;  %1707 = vmatmul.msk.f32.gmra.mxu2 %vm249_vm0, %v2277_v11  ;;  %v2361_v33 = vld [vmem:[%s2251_s11 + $0x22] sm:$0xff]  ;;  %v2388_v37 = vld [vmem:[%s2251_s11 + $0x3a] sm:$0xff]  ;;  %v2391_v38 = vld [vmem:[%s2251_s11 + $0x50] sm:$0xff] }
  0x28   : > { %1711 = vmatmul.msk.f32.gmra.mxu3 %vm249_vm0, %v2283_v13  ;;  %1699 = vmatmul.msk.f32.gmra.mxu0 %vm249_vm0, %v232_v14  ;;  %v2402_v39 = vld [vmem:[%s2251_s11 + $0x4a] sm:$0xff]  ;;  %v2405_v40 = vld [vmem:[%s2251_s11 + $0x60] sm:$0xff]  ;;  %v2416_v41 = vld [vmem:[%s2251_s11 + $0x52] sm:$0xff] }
  0x29   : > { %v2419_v42 = vld [vmem:[%s2251_s11 + $0x68] sm:$0xff]  ;;  %v2433_v44 = vld [vmem:[%s2251_s11 + $0x78] sm:$0xff]  ;;  %v2447_v46 = vld [vmem:[%s2251_s11 + $0x80] sm:$0xff] }
  0x2a   : > { %v2430_v43 = vld [vmem:[%s2251_s11 + $0x62] sm:$0xff]  ;;  %v2444_v45 = vld [vmem:[%s2251_s11 + $0x6a] sm:$0xff]  ;;  %v2458_v47 = vld [vmem:[%s2251_s11 + $0x7a] sm:$0xff] }
  0x2b   : > { %v2461_v48 = vld [vmem:[%s2251_s11 + $0x90] sm:$0xff]  ;;  %v2472_v49 = vld [vmem:[%s2251_s11 + $0x82] sm:$0xff]  ;;  %v2475_v50 = vld [vmem:[%s2251_s11 + $0x98] sm:$0xff] }
  0x2c   : > { %v2488_v52 = vld [vmem:[%s2251_s11 + $0x92] sm:$0xff]  ;;  %v2491_v53 = vld [vmem:[%s2251_s11 + $0xa8] sm:$0xff]  ;;  %v2508_v58 = vld [vmem:[%s2251_s11 + $0x9a] sm:$0xff] }
  0x2d   : > { %v2511_v59 = vld [vmem:[%s2251_s11 + $0xb0] sm:$0xff]  ;;  %v2531_v1 = vld [vmem:[%s2251_s11 + $0xc0] sm:$0xff]  ;;  %v2554_v14 = vld [vmem:[%s2251_s11 + $0xc8] sm:$0xff] }
  0x2e   : > { %v2528_v0 = vld [vmem:[%s2251_s11 + $0xaa] sm:$0xff]  ;;  %v2534_v3 = vld [vmem:[%s2251_s11 + $0xc1] sm:$0xff]  ;;  %v2551_v12 = vld [vmem:[%s2251_s11 + $0xb2] sm:$0xff] }
  0x2f   : > { %1704 = vmatmul.msk.f32.gmra.mxu1 %vm249_vm0, %v2300_v17  ;;  %1708 = vmatmul.msk.f32.gmra.mxu2 %vm249_vm0, %v2303_v18  ;;  %v2557_v16 = vld [vmem:[%s2251_s11 + $0xc9] sm:$0xff] }
  0x30   : > { %1712 = vmatmul.msk.f32.gmra.mxu3 %vm249_vm0, %v2306_v19  ;;  %1700 = vmatmul.msk.f32.gmra.mxu0 %vm249_vm0, %v233_v20  ;;  %2876 = vst [vmem:[#allocation7_spill] sm:$0xff] %v2557_v16 }
  0x37   : > { %1705 = vmatmul.msk.f32.gmra.mxu1 %vm249_vm0, %v2317_v21  ;;  %1709 = vmatmul.msk.f32.gmra.mxu2 %vm249_vm0, %v2320_v22 }
  0x38   : > { %1713 = vmatmul.msk.f32.gmra.mxu3 %vm249_vm0, %v2323_v23  ;;  %1701 = vmatmul.msk.f32.gmra.mxu0 %vm249_vm0, %v234_v24 }
  0x3f   : > { %1714 = vmatmul.msk.f32.vlgmr.msrb.gmra.mxu1 %vm249_vm0, %v214_v25  ;;  %1731 = vmatmul.msk.f32.vlgmr.msrb.gmra.mxu2 %vm249_vm0, %v476_v26 }
  0x40   : > { %1766 = vmatmul.msk.f32.vlgmr.msrb.gmra.mxu3 %vm249_vm0, %v1749_v27  ;;  %1799 = vmatmul.msk.f32.vlgmr.msrb.gmra.mxu0 %vm249_vm0, %v233_v20 }
  0x47   : > { %1715 = vmatmul.msk.f32.gmra.mxu1 %vm249_vm0, %v215_v28  ;;  %1732 = vmatmul.msk.f32.gmra.mxu2 %vm249_vm0, %v477_v29 }
  0x48   : > { %1767 = vmatmul.msk.f32.gmra.mxu3 %vm249_vm0, %v1750_v30  ;;  %1800 = vmatmul.msk.f32.gmra.mxu0 %vm249_vm0, %v234_v24 }
  0x4f   : > { %1716 = vmatmul.msk.f32.gmra.mxu1 %vm249_vm0, %v1749_v27  ;;  %1733 = vmatmul.msk.f32.gmra.mxu2 %vm249_vm0, %v2348_v31 }
  0x50   : > { %1768 = vmatmul.msk.f32.gmra.mxu3 %vm249_vm0, %v2351_v32  ;;  %1801 = vmatmul.msk.f32.gmra.mxu0 %vm249_vm0, %v2254_v5 }
  0x57   : > { %1717 = vmatmul.msk.f32.gmra.mxu1 %vm249_vm0, %v1750_v30  ;;  %1734 = vmatmul.msk.f32.gmra.mxu2 %vm249_vm0, %v2361_v33 }
  0x58   : > { %1769 = vmatmul.msk.f32.gmra.mxu3 %vm249_vm0, %v2364_v34  ;;  %1802 = vmatmul.msk.f32.gmra.mxu0 %vm249_vm0, %v2274_v10 }
  0x5f   : > { %1718 = vmatmul.msk.f32.gmra.mxu1 %vm249_vm0, %v2351_v32  ;;  %1735 = vmatmul.msk.f32.gmra.mxu2 %vm249_vm0, %v2374_v35 }
  0x60   : > { %1770 = vmatmul.msk.f32.gmra.mxu3 %vm249_vm0, %v2377_v36  ;;  %1803 = vmatmul.msk.f32.gmra.mxu0 %vm249_vm0, %v2300_v17 }
  0x67   : > { %1719 = vmatmul.msk.f32.gmra.mxu1 %vm249_vm0, %v2364_v34  ;;  %1736 = vmatmul.msk.f32.gmra.mxu2 %vm249_vm0, %v2388_v37 }
  0x68   : > { %1771 = vmatmul.msk.f32.gmra.mxu3 %vm249_vm0, %v2391_v38  ;;  %1804 = vmatmul.msk.f32.gmra.mxu0 %vm249_vm0, %v2317_v21 }
  0x6f   : > { %1720 = vmatmul.msk.f32.gmra.mxu1 %vm249_vm0, %v2377_v36  ;;  %1737 = vmatmul.msk.f32.gmra.mxu2 %vm249_vm0, %v2402_v39 }
  0x70   : > { %1772 = vmatmul.msk.f32.gmra.mxu3 %vm249_vm0, %v2405_v40  ;;  %1805 = vmatmul.msk.f32.gmra.mxu0 %vm249_vm0, %v2257_v6 }
  0x77   : > { %1721 = vmatmul.msk.f32.gmra.mxu1 %vm249_vm0, %v2391_v38  ;;  %1738 = vmatmul.msk.f32.gmra.mxu2 %vm249_vm0, %v2416_v41 }
  0x78   : > { %1773 = vmatmul.msk.f32.gmra.mxu3 %vm249_vm0, %v2419_v42  ;;  %1806 = vmatmul.msk.f32.gmra.mxu0 %vm249_vm0, %v2277_v11 }
  0x7f   : > { %1722 = vmatmul.msk.f32.gmra.mxu1 %vm249_vm0, %v2405_v40  ;;  %1739 = vmatmul.msk.f32.gmra.mxu2 %vm249_vm0, %v2430_v43 }
  0x80   : > { %1774 = vmatmul.msk.f32.gmra.mxu3 %vm249_vm0, %v2433_v44  ;;  %1807 = vmatmul.msk.f32.gmra.mxu0 %vm249_vm0, %v2303_v18 }
  0x87   : > { %1723 = vmatmul.msk.f32.gmra.mxu1 %vm249_vm0, %v2419_v42  ;;  %1740 = vmatmul.msk.f32.gmra.mxu2 %vm249_vm0, %v2444_v45 }
  0x88   : > { %1775 = vmatmul.msk.f32.gmra.mxu3 %vm249_vm0, %v2447_v46  ;;  %1808 = vmatmul.msk.f32.gmra.mxu0 %vm249_vm0, %v2320_v22 }
  0x8f   : > { %1724 = vmatmul.msk.f32.gmra.mxu1 %vm249_vm0, %v2433_v44  ;;  %1741 = vmatmul.msk.f32.gmra.mxu2 %vm249_vm0, %v2458_v47 }
  0x90   : > { %1776 = vmatmul.msk.f32.gmra.mxu3 %vm249_vm0, %v2461_v48  ;;  %1809 = vmatmul.msk.f32.gmra.mxu0 %vm249_vm0, %v2260_v7 }
  0x97   : > { %1725 = vmatmul.msk.f32.gmra.mxu1 %vm249_vm0, %v2447_v46  ;;  %1742 = vmatmul.msk.f32.gmra.mxu2 %vm249_vm0, %v2472_v49 }
  0x98   : > { %1777 = vmatmul.msk.f32.gmra.mxu3 %vm249_vm0, %v2475_v50  ;;  %1810 = vmatmul.msk.f32.gmra.mxu0 %vm249_vm0, %v2283_v13 }
  0x9c   : > { %v2485_v51 = vpop.f32.mrf.mxu1 }
  0x9d   : > { %v315_v54 = vpop.f32.mrf.mxu0 }
  0x9f   : > { %1726 = vmatmul.msk.f32.gmra.mxu1 %vm249_vm0, %v2461_v48  ;;  %1743 = vmatmul.msk.f32.gmra.mxu2 %vm249_vm0, %v2488_v52 }
  0xa0   : > { %1778 = vmatmul.msk.f32.gmra.mxu3 %vm249_vm0, %v2491_v53  ;;  %1811 = vmatmul.msk.f32.gmra.mxu0 %vm249_vm0, %v2306_v19 }
  0xa2   : > { %v2501_v55 = vpop.f32.mrf.mxu2 }
  0xa3   : > { %v2503_v56 = vpop.f32.mrf.mxu3 }
  0xa4   : > { %v2505_v57 = vpop.f32.mrf.mxu1 }
  0xa5   : > { %v318_v60 = vpop.f32.mrf.mxu0 }
  0xa7   : > { %1727 = vmatmul.msk.f32.gmra.mxu1 %vm249_vm0, %v2475_v50  ;;  %1744 = vmatmul.msk.f32.gmra.mxu2 %vm249_vm0, %v2508_v58 }
  0xa8   : > { %1779 = vmatmul.msk.f32.gmra.mxu3 %vm249_vm0, %v2511_v59  ;;  %1812 = vmatmul.msk.f32.gmra.mxu0 %vm249_vm0, %v2323_v23 }
  0xaa   : > { %v2521_v61 = vpop.f32.mrf.mxu2 }
  0xab   : > { %v2523_v62 = vpop.f32.mrf.mxu3 }
  0xac   : > { %2874 = vst [vmem:[#allocation5_spill] sm:$0xff] %v2523_v62  ;;  %v2525_v63 = vpop.f32.mrf.mxu1 }
  0xad   : > { %v321_v2 = vpop.f32.mrf.mxu0 }
  0xaf   : > { %1728 = vmatmul.msk.f32.gmra.mxu1 %vm249_vm0, %v2491_v53  ;;  %1745 = vmatmul.msk.f32.gmra.mxu2 %vm249_vm0, %v2528_v0 }
  0xb0   : > { %1780 = vmatmul.msk.f32.gmra.mxu3 %vm249_vm0, %v2531_v1  ;;  %1813 = vmatmul.msk.f32.gmra.mxu0 %vm249_vm0, %v2534_v3 }
  0xb2   : > { %v2544_v4 = vpop.f32.mrf.mxu2 }
  0xb3   : > { %v2546_v8 = vpop.f32.mrf.mxu3 }
  0xb4   : > { %2875 = vst [vmem:[#allocation6_spill] sm:$0xff] %v2546_v8  ;;  %v2548_v9 = vpop.f32.mrf.mxu1 }
  0xb5   : > { %v324_v15 = vpop.f32.mrf.mxu0 }
  0xb7   : > { %1729 = vmatmul.msk.f32.gmra.mxu1 %vm249_vm0, %v2511_v59  ;;  %1746 = vmatmul.msk.f32.gmra.mxu2 %vm249_vm0, %v2551_v12 }
  0xb8   : > { %1781 = vmatmul.msk.f32.gmra.mxu3 %vm249_vm0, %v2554_v14  ;;  %1814 = vmatmul.msk.f32.gmra.mxu0 %vm249_vm0, %v2557_v16 }
  0xba   : > { %v2567_v20 = vpop.f32.mrf.mxu2 }
  0xbb   : > { %v2569_v24 = vpop.f32.mrf.mxu3 }
  0xbc   : > { %2877 = vst [vmem:[#allocation8_spill] sm:$0xff] %v2569_v24  ;;  %v428_v25 = vpop.f32.mrf.mxu1 }
  0xbd   : > { %v856_v26 = vpop.f32.mrf.mxu0  ;;  %v429_v27 = vadd.f32 %v428_v25, %v315_v54 }
  0xbf   : > { %1832 = vmatmul.msk.f32.vlgmr.msra.gmra.mxu1 %vm249_vm0, %v2348_v31  ;;  %1867 = vmatmul.msk.f32.vlgmr.msra.gmra.mxu2 %vm249_vm0, %v2351_v32 }
  0xc0   : > { %1900 = vmatmul.msk.f32.vlgmr.msra.gmra.mxu3 %vm249_vm0, %v2254_v5  ;;  %1933 = vmatmul.msk.f32.vlgmr.msra.gmra.mxu0 %vm249_vm0, %v2374_v35 }
  0xc2   : > { %v559_v28 = vpop.f32.mrf.mxu2 }
  0xc3   : > { %v607_v29 = vadd.f32 %v559_v28, %v429_v27  ;;  %v709_v30 = vpop.f32.mrf.mxu3 }
  0xc4   : > { %v431_v8 = vpop.f32.mrf.mxu1 }
  0xc5   : > { %v757_v24 = vadd.f32 %v709_v30, %v607_v29  ;;  %v859_v62 = vpop.f32.mrf.mxu0  ;;  %v432_v5 = vadd.f32 %v431_v8, %v318_v60 }
  0xc7   : > { %v2579_v16 = vadd.f32 %v856_v26, %v757_v24  ;;  %1833 = vmatmul.msk.f32.gmra.mxu1 %vm249_vm0, %v2361_v33  ;;  %1868 = vmatmul.msk.f32.gmra.mxu2 %vm249_vm0, %v2364_v34 }
  0xc8   : > { %1901 = vmatmul.msk.f32.gmra.mxu3 %vm249_vm0, %v2274_v10  ;;  %1934 = vmatmul.msk.f32.gmra.mxu0 %vm249_vm0, %v2388_v37 }
  0xca   : > { %v562_v31 = vpop.f32.mrf.mxu2 }
  0xcb   : > { %v608_v32 = vadd.f32 %v562_v31, %v432_v5  ;;  %v712_v54 = vpop.f32.mrf.mxu3 }
  0xcc   : > { %v434_v25 = vpop.f32.mrf.mxu1 }
  0xcd   : > { %v758_v27 = vadd.f32 %v712_v54, %v608_v32  ;;  %v862_v24 = vpop.f32.mrf.mxu0  ;;  %v435_v10 = vadd.f32 %v434_v25, %v321_v2 }
  0xcf   : > { %v2589_v26 = vadd.f32 %v859_v62, %v758_v27  ;;  %1834 = vmatmul.msk.f32.gmra.mxu1 %vm249_vm0, %v2374_v35  ;;  %1869 = vmatmul.msk.f32.gmra.mxu2 %vm249_vm0, %v2377_v36 }
  0xd0   : > { %1902 = vmatmul.msk.f32.gmra.mxu3 %vm249_vm0, %v2300_v17  ;;  %1935 = vmatmul.msk.f32.gmra.mxu0 %vm249_vm0, %v2402_v39 }
  0xd2   : > { %v565_v33 = vpop.f32.mrf.mxu2 }
  0xd3   : > { %v609_v34 = vadd.f32 %v565_v33, %v435_v10  ;;  %v715_v60 = vpop.f32.mrf.mxu3 }
  0xd4   : > { %v437_v8 = vpop.f32.mrf.mxu1 }
  0xd5   : > { %v759_v28 = vadd.f32 %v715_v60, %v609_v34  ;;  %v865_v62 = vpop.f32.mrf.mxu0  ;;  %v438_v17 = vadd.f32 %v437_v8, %v324_v15 }
  0xd7   : > { %v2599_v29 = vadd.f32 %v862_v24, %v759_v28  ;;  %1835 = vmatmul.msk.f32.gmra.mxu1 %vm249_vm0, %v2388_v37  ;;  %1870 = vmatmul.msk.f32.gmra.mxu2 %vm249_vm0, %v2391_v38 }
  0xd8   : > { %1903 = vmatmul.msk.f32.gmra.mxu3 %vm249_vm0, %v2317_v21  ;;  %1936 = vmatmul.msk.f32.gmra.mxu0 %vm249_vm0, %v2416_v41 }
  0xda   : > { %v568_v35 = vpop.f32.mrf.mxu2 }
  0xdb   : > { %v610_v36 = vadd.f32 %v568_v35, %v438_v17  ;;  %v718_v2 = vpop.f32.mrf.mxu3 }
  0xdc   : > { %v440_v30 = vpop.f32.mrf.mxu1 }
  0xdd   : > { %v760_v5 = vadd.f32 %v718_v2, %v610_v36  ;;  %v868_v31 = vpop.f32.mrf.mxu0  ;;  %v441_v21 = vadd.f32 %v440_v30, %v2485_v51 }
  0xdf   : > { %v2609_v32 = vadd.f32 %v865_v62, %v760_v5  ;;  %1836 = vmatmul.msk.f32.gmra.mxu1 %vm249_vm0, %v2402_v39  ;;  %1871 = vmatmul.msk.f32.gmra.mxu2 %vm249_vm0, %v2405_v40 }
  0xe0   : > { %1904 = vmatmul.msk.f32.gmra.mxu3 %vm249_vm0, %v2257_v6  ;;  %1937 = vmatmul.msk.f32.gmra.mxu0 %vm249_vm0, %v2430_v43 }
  0xe2   : > { %v571_v37 = vpop.f32.mrf.mxu2 }
  0xe3   : > { %v611_v38 = vadd.f32 %v571_v37, %v441_v21  ;;  %v721_v15 = vpop.f32.mrf.mxu3 }
  0xe4   : > { %v443_v54 = vpop.f32.mrf.mxu1 }
  0xe5   : > { %v761_v25 = vadd.f32 %v721_v15, %v611_v38  ;;  %v871_v27 = vpop.f32.mrf.mxu0  ;;  %v444_v6 = vadd.f32 %v443_v54, %v2505_v57 }
  0xe7   : > { %v2620_v24 = vadd.f32 %v868_v31, %v761_v25  ;;  %1837 = vmatmul.msk.f32.gmra.mxu1 %vm249_vm0, %v2416_v41  ;;  %1872 = vmatmul.msk.f32.gmra.mxu2 %vm249_vm0, %v2419_v42 }
  0xe8   : > { %1905 = vmatmul.msk.f32.gmra.mxu3 %vm249_vm0, %v2277_v11  ;;  %1938 = vmatmul.msk.f32.gmra.mxu0 %vm249_vm0, %v2444_v45 }
  0xea   : > { %v574_v39 = vpop.f32.mrf.mxu2 }
  0xeb   : > { %v612_v40 = vadd.f32 %v574_v39, %v444_v6  ;;  %v724_v51 = vpop.f32.mrf.mxu3 }
  0xec   : > { %v446_v10 = vpop.f32.mrf.mxu1 }
  0xed   : > { %v762_v33 = vadd.f32 %v724_v51, %v612_v40  ;;  %v874_v34 = vpop.f32.mrf.mxu0  ;;  %v447_v11 = vadd.f32 %v446_v10, %v2525_v63 }
  0xef   : > { %v2631_v60 = vadd.f32 %v871_v27, %v762_v33  ;;  %1838 = vmatmul.msk.f32.gmra.mxu1 %vm249_vm0, %v2430_v43  ;;  %1873 = vmatmul.msk.f32.gmra.mxu2 %vm249_vm0, %v2433_v44 }
  0xf0   : > { %1906 = vmatmul.msk.f32.gmra.mxu3 %vm249_vm0, %v2303_v18  ;;  %1939 = vmatmul.msk.f32.gmra.mxu0 %vm249_vm0, %v2458_v47 }
  0xf2   : > { %v577_v41 = vpop.f32.mrf.mxu2 }
  0xf3   : > { %v613_v42 = vadd.f32 %v577_v41, %v447_v11  ;;  %v727_v57 = vpop.f32.mrf.mxu3 }
  0xf4   : > { %v449_v8 = vpop.f32.mrf.mxu1 }
  0xf5   : > { %v763_v28 = vadd.f32 %v727_v57, %v613_v42  ;;  %v877_v62 = vpop.f32.mrf.mxu0  ;;  %v450_v18 = vadd.f32 %v449_v8, %v2548_v9 }
  0xf7   : > { %v2642_v17 = vadd.f32 %v874_v34, %v763_v28  ;;  %1839 = vmatmul.msk.f32.gmra.mxu1 %vm249_vm0, %v2444_v45  ;;  %1874 = vmatmul.msk.f32.gmra.mxu2 %vm249_vm0, %v2447_v46  ;;  %v1928_v34 = vld [vmem:[%s2251_s11 + $0xc2] sm:$0xff] }
  0xf8   : > { %1907 = vmatmul.msk.f32.gmra.mxu3 %vm249_vm0, %v2320_v22  ;;  %1940 = vmatmul.msk.f32.gmra.mxu0 %vm249_vm0, %v2472_v49 }
  0xfa   : > { %v580_v43 = vpop.f32.mrf.mxu2 }
  0xfb   : > { %v614_v44 = vadd.f32 %v580_v43, %v450_v18  ;;  %v730_v63 = vpop.f32.mrf.mxu3 }
  0xfc   : > { %v452_v35 = vpop.f32.mrf.mxu1 }
  0xfd   : > { %v764_v36 = vadd.f32 %v730_v63, %v614_v44  ;;  %v880_v2 = vpop.f32.mrf.mxu0  ;;  %v453_v22 = vadd.f32 %v452_v35, %v2501_v55  ;;  %v1864_v44 = vld [vmem:[%s2251_s11 + $0xd8] sm:$0xff] }
  0xfe   : > { %v1897_v35 = vld [vmem:[%s2251_s11 + $0xd9] sm:$0xff] }
  0xff   : > { %v2653_v30 = vadd.f32 %v877_v62, %v764_v36  ;;  %1840 = vmatmul.msk.f32.gmra.mxu1 %vm249_vm0, %v2458_v47  ;;  %1875 = vmatmul.msk.f32.gmra.mxu2 %vm249_vm0, %v2461_v48  ;;  %v1930_v36 = vld [vmem:[%s2251_s11 + $0xda] sm:$0xff] }
 0x100   : > { %1908 = vmatmul.msk.f32.gmra.mxu3 %vm249_vm0, %v2260_v7  ;;  %1941 = vmatmul.msk.f32.gmra.mxu0 %vm249_vm0, %v2488_v52 }
 0x102   : > { %v583_v45 = vpop.f32.mrf.mxu2 }
 0x103   : > { %v615_v46 = vadd.f32 %v583_v45, %v453_v22  ;;  %v733_v9 = vpop.f32.mrf.mxu3 }
 0x104   : > { %v455_v5 = vpop.f32.mrf.mxu1 }
 0x105   : > { %v765_v31 = vadd.f32 %v733_v9, %v615_v46  ;;  %v883_v21 = vpop.f32.mrf.mxu0  ;;  %v456_v7 = vadd.f32 %v455_v5, %v2521_v61 }
 0x107   : > { %v2664_v37 = vadd.f32 %v880_v2, %v765_v31  ;;  %1841 = vmatmul.msk.f32.gmra.mxu1 %vm249_vm0, %v2472_v49  ;;  %1876 = vmatmul.msk.f32.gmra.mxu2 %vm249_vm0, %v2475_v50  ;;  %v2880_v2 = vld [vmem:[#allocation6_spill] sm:$0xff]  ;;  %v1865_v31 = vld [vmem:[%s2251_s11 + $0xe0] sm:$0xff] }
 0x108   : > { %1909 = vmatmul.msk.f32.gmra.mxu3 %vm249_vm0, %v2283_v13  ;;  %1942 = vmatmul.msk.f32.gmra.mxu0 %vm249_vm0, %v2508_v58 }
 0x10a   : > { %v586_v47 = vpop.f32.mrf.mxu2 }
 0x10b   : > { %v616_v48 = vadd.f32 %v586_v47, %v456_v7  ;;  %v736_v55 = vpop.f32.mrf.mxu3  ;;  %v1898_v7 = vld [vmem:[%s2251_s11 + $0xe1] sm:$0xff] }
 0x10c   : > { %v458_v38 = vpop.f32.mrf.mxu1 }
 0x10d   : > { %v766_v15 = vadd.f32 %v736_v55, %v616_v48  ;;  %v886_v54 = vpop.f32.mrf.mxu0  ;;  %v459_v13 = vadd.f32 %v458_v38, %v2544_v4  ;;  %v1931_v48 = vld [vmem:[%s2251_s11 + $0xe2] sm:$0xff]  ;;  %v2881_v38 = vld [vmem:[#allocation8_spill] sm:$0xff] }
 0x10f   : > { %v2675_v25 = vadd.f32 %v883_v21, %v766_v15  ;;  %1842 = vmatmul.msk.f32.gmra.mxu1 %vm249_vm0, %v2488_v52  ;;  %1877 = vmatmul.msk.f32.gmra.mxu2 %vm249_vm0, %v2491_v53 }
 0x110   : > { %1910 = vmatmul.msk.f32.gmra.mxu3 %vm249_vm0, %v2306_v19  ;;  %1943 = vmatmul.msk.f32.gmra.mxu0 %vm249_vm0, %v2528_v0 }
 0x112   : > { %v589_v49 = vpop.f32.mrf.mxu2 }
 0x113   : > { %v617_v50 = vadd.f32 %v589_v49, %v459_v13  ;;  %v739_v61 = vpop.f32.mrf.mxu3 }
 0x114   : > { %v461_v27 = vpop.f32.mrf.mxu1 }
 0x115   : > { %v767_v6 = vadd.f32 %v739_v61, %v617_v50  ;;  %v889_v39 = vpop.f32.mrf.mxu0  ;;  %v462_v19 = vadd.f32 %v461_v27, %v2567_v20 }
 0x117   : > { %v2686_v40 = vadd.f32 %v886_v54, %v767_v6  ;;  %1843 = vmatmul.msk.f32.gmra.mxu1 %vm249_vm0, %v2508_v58  ;;  %1878 = vmatmul.msk.f32.gmra.mxu2 %vm249_vm0, %v2511_v59 }
 0x118   : > { %1911 = vmatmul.msk.f32.gmra.mxu3 %vm249_vm0, %v2323_v23  ;;  %1944 = vmatmul.msk.f32.gmra.mxu0 %vm249_vm0, %v2551_v12 }
 0x11a   : > { %v592_v52 = vpop.f32.mrf.mxu2 }
 0x11b   : > { %v618_v53 = vadd.f32 %v592_v52, %v462_v19  ;;  %v742_v4 = vpop.f32.mrf.mxu3 }
 0x11c   : > { %v464_v51 = vpop.f32.mrf.mxu1 }
 0x11d   : > { %v768_v10 = vadd.f32 %v742_v4, %v618_v53  ;;  %v892_v33 = vpop.f32.mrf.mxu0  ;;  %v465_v23 = vadd.f32 %v464_v51, %v2503_v56  ;;  %v2879_v56 = vld [vmem:[#allocation5_spill] sm:$0xff] }
 0x11f   : > { %v2698_v58 = vadd.f32 %v889_v39, %v768_v10  ;;  %1844 = vmatmul.msk.f32.gmra.mxu1 %vm249_vm0, %v2528_v0  ;;  %1879 = vmatmul.msk.f32.gmra.mxu2 %vm249_vm0, %v2531_v1  ;;  %v1929_v0 = vld [vmem:[%s2251_s11 + $0xca] sm:$0xff]  ;;  %v2745_v10 = vld [vmem:[%s2868_s2] ss:$0 sm:$0xff]  ;;  %s2052_s11 = scalar_lea.hbm %s2051_s10, 128 }
 0x120   : > { %1912 = vmatmul.msk.f32.gmra.mxu3 %vm249_vm0, %v2534_v3  ;;  %1945 = vmatmul.msk.f32.gmra.mxu0 %vm249_vm0, %v1928_v34  ;;  %v2878_v1 = vld [vmem:[#allocation7_spill] sm:$0xff]  ;;  %p2053_p13 = scmp.ne.s32.totalorder %s2051_s10, %s2052_s11  ;;  %p2058_p4 = scmp.lt.s32.totalorder %s2056_s23, %s2052_s11 }
 0x122   : > { %v595_v59 = vpop.f32.mrf.mxu2  ;;  %p2054_p0 = pnand %p2053_p13, %p2210_p3  ;;  %p2059_p5 = por %p2058_p4, %p2057_p2 }
 0x123   : > { %v619_v20 = vadd.f32 %v595_v59, %v465_v23  ;;  %v745_v11 = vpop.f32.mrf.mxu3  ;;  %v2751_v23 = vld [vmem:[%s2869_s3] ss:$0 sm:$0xff] }
 0x124   : > { %v467_v41 = vpop.f32.mrf.mxu1  ;;  %p2055_p1 = pneg %p2054_p0 }
 0x125   : > { %v769_v42 = vadd.f32 %v745_v11, %v619_v20  ;;  %v895_v57 = vpop.f32.mrf.mxu0  ;;  %v468_v3 = vadd.f32 %v467_v41, %v2879_v56 }
 0x126   : > { %p2060_p6 = pnand %p2059_p5, %p2055_p1 }
 0x127   : > { %v2709_v8 = vadd.f32 %v892_v33, %v769_v42  ;;  %1845 = vmatmul.msk.f32.gmra.mxu1 %vm249_vm0, %v2551_v12  ;;  %1880 = vmatmul.msk.f32.gmra.mxu2 %vm249_vm0, %v2554_v14 }
 0x128   : > { %1913 = vmatmul.msk.f32.gmra.mxu3 %vm249_vm0, %v2878_v1  ;;  %1946 = vmatmul.msk.f32.gmra.mxu0 %vm249_vm0, %v1929_v0 }
 0x12a   : > { %v598_v28 = vpop.f32.mrf.mxu2 }
 0x12b   : > { %v620_v62 = vadd.f32 %v598_v28, %v468_v3  ;;  %v748_v18 = vpop.f32.mrf.mxu3 }
 0x12c   : > { %v470_v43 = vpop.f32.mrf.mxu1 }
 0x12d   : > { %v770_v63 = vadd.f32 %v748_v18, %v620_v62  ;;  %v898_v12 = vpop.f32.mrf.mxu0  ;;  %v471_v22 = vadd.f32 %v470_v43, %v2880_v2 }
 0x12f   : > { %v2722_v14 = vadd.f32 %v895_v57, %v770_v63  ;;  %1846 = vmatmul.msk.f32.gmra.mxu1 %vm249_vm0, %v1928_v34  ;;  %1881 = vmatmul.msk.f32.gmra.mxu2 %vm249_vm0, %v1864_v44 }
 0x130   : > { %1914 = vmatmul.msk.f32.gmra.mxu3 %vm249_vm0, %v1897_v35  ;;  %1947 = vmatmul.msk.f32.gmra.mxu0 %vm249_vm0, %v1930_v36 }
 0x132   : > { %v601_v45 = vpop.f32.mrf.mxu2 }
 0x133   : > { %v621_v46 = vadd.f32 %v601_v45, %v471_v22  ;;  %v751_v9 = vpop.f32.mrf.mxu3 }
 0x134   : > { %v473_v5 = vpop.f32.mrf.mxu1 }
 0x135   : > { %v771_v21 = vadd.f32 %v751_v9, %v621_v46  ;;  %v901_v47 = vpop.f32.mrf.mxu0  ;;  %v474_v15 = vadd.f32 %v473_v5, %v2881_v38 }
 0x137   : > { %v2732_v55 = vadd.f32 %v898_v12, %v771_v21  ;;  %1847 = vmatmul.msk.f32.gmra.mxu1 %vm249_vm0, %v1929_v0  ;;  %1882 = vmatmul.msk.f32.gmra.mxu2 %vm249_vm0, %v1865_v31 }
 0x138   : > { %1915 = vmatmul.msk.f32.gmra.mxu3 %vm249_vm0, %v1898_v7  ;;  %1948 = vmatmul.msk.f32.gmra.mxu0 %vm249_vm0, %v1931_v48 }
 0x13a   : > { %v604_v54 = vpop.f32.mrf.mxu2 }
 0x13b   : > { %v622_v13 = vadd.f32 %v604_v54, %v474_v15  ;;  %v754_v49 = vpop.f32.mrf.mxu3 }
 0x13c   : > { %v1003_v50 = vpop.f32.mrf.mxu1 }
 0x13d   : > { %v772_v61 = vadd.f32 %v754_v49, %v622_v13  ;;  %v1447_v27 = vpop.f32.mrf.mxu0  ;;  %v1051_v39 = vadd.f32 %v1003_v50, %v2579_v16 }
 0x13f   : > { %v2739_v6 = vadd.f32 %v901_v47, %v772_v61 }
 0x142   : > { %v1153_v19 = vpop.f32.mrf.mxu2 }
 0x143   : > { %v1201_v52 = vadd.f32 %v1153_v19, %v1051_v39  ;;  %v1300_v53 = vpop.f32.mrf.mxu3 }
 0x144   : > { %v1006_v4 = vpop.f32.mrf.mxu1 }
 0x145   : > { %v1348_v51 = vadd.f32 %v1300_v53, %v1201_v52  ;;  %v1450_v33 = vpop.f32.mrf.mxu0  ;;  %v1052_v16 = vadd.f32 %v1006_v4, %v2589_v26 }
 0x147   : > { %v1495_v34 = vadd.f32 %v1447_v27, %v1348_v51 }
 0x149   : > { %v1515_v59 = vmul.f32 %v2745_v10, %v1495_v34 }
 0x14a   : > { %v1156_v20 = vpop.f32.mrf.mxu2 }
 0x14b   : > { %v1535_v11 = vadd.f32 %v2751_v23, %v1515_v59  ;;  %v1202_v41 = vadd.f32 %v1156_v20, %v1052_v16  ;;  %v1303_v42 = vpop.f32.mrf.mxu3 }
 0x14c   : > { %v1009_v57 = vpop.f32.mrf.mxu1 }
 0x14d   : > { %v1551_v0 = vmax.f32 %v1535_v11, 0.0  ;;  %v1349_v1 = vadd.f32 %v1303_v42, %v1202_v41  ;;  %v1453_v56 = vpop.f32.mrf.mxu0  ;;  %v1053_v26 = vadd.f32 %v1009_v57, %v2599_v29 }
 0x14f   : > { %1567 = vst [vmem:[%s2758_s13] sm:$0xff] %v1551_v0  ;;  %v1496_v3 = vadd.f32 %v1450_v33, %v1349_v1 }
 0x151   : > { %v1516_v28 = vmul.f32 %v2745_v10, %v1496_v3 }
 0x152   : > { %v1159_v62 = vpop.f32.mrf.mxu2 }
 0x153   : > { %v1536_v18 = vadd.f32 %v2751_v23, %v1516_v28  ;;  %v1203_v43 = vadd.f32 %v1159_v62, %v1053_v26  ;;  %v1306_v44 = vpop.f32.mrf.mxu3 }
 0x154   : > { %v1012_v63 = vpop.f32.mrf.mxu1 }
 0x155   : > { %v1552_v35 = vmax.f32 %v1536_v18, 0.0  ;;  %v1350_v12 = vadd.f32 %v1306_v44, %v1203_v43  ;;  %v1456_v36 = vpop.f32.mrf.mxu0  ;;  %v1054_v22 = vadd.f32 %v1012_v63, %v2609_v32 }
 0x157   : > { %1568 = vst [vmem:[%s2758_s13 + $0x8] sm:$0xff] %v1552_v35  ;;  %v1497_v2 = vadd.f32 %v1453_v56, %v1350_v12 }
 0x159   : > { %v1517_v45 = vmul.f32 %v2745_v10, %v1497_v2 }
 0x15a   : > { %v1162_v46 = vpop.f32.mrf.mxu2 }
 0x15b   : > { %v1537_v29 = vadd.f32 %v2751_v23, %v1517_v45  ;;  %v1204_v9 = vadd.f32 %v1162_v46, %v1054_v22  ;;  %v1309_v5 = vpop.f32.mrf.mxu3 }
 0x15c   : > { %v1015_v31 = vpop.f32.mrf.mxu1 }
 0x15d   : > { %v1553_v21 = vmax.f32 %v1537_v29, 0.0  ;;  %v1351_v7 = vadd.f32 %v1309_v5, %v1204_v9  ;;  %v1459_v47 = vpop.f32.mrf.mxu0  ;;  %v1055_v38 = vadd.f32 %v1015_v31, %v2620_v24 }
 0x15f   : > { %1569 = vst [vmem:[%s2758_s13 + $0x10] sm:$0xff] %v1553_v21  ;;  %v1498_v48 = vadd.f32 %v1456_v36, %v1351_v7 }
 0x161   : > { %v1518_v15 = vmul.f32 %v2745_v10, %v1498_v48 }
 0x162   : > { %v1165_v54 = vpop.f32.mrf.mxu2 }
 0x163   : > { %v1538_v32 = vadd.f32 %v2751_v23, %v1518_v15  ;;  %v1205_v13 = vadd.f32 %v1165_v54, %v1055_v38  ;;  %v1312_v49 = vpop.f32.mrf.mxu3 }
 0x164   : > { %v1018_v50 = vpop.f32.mrf.mxu1 }
 0x165   : > { %v1554_v61 = vmax.f32 %v1538_v32, 0.0  ;;  %v1352_v27 = vadd.f32 %v1312_v49, %v1205_v13  ;;  %v1462_v39 = vpop.f32.mrf.mxu0  ;;  %v1056_v52 = vadd.f32 %v1018_v50, %v2631_v60 }
 0x167   : > { %1570 = vst [vmem:[%s2758_s13 + $0x18] sm:$0xff] %v1554_v61  ;;  %v1499_v19 = vadd.f32 %v1459_v47, %v1352_v27 }
 0x169   : > { %v1519_v53 = vmul.f32 %v2745_v10, %v1499_v19 }
 0x16a   : > { %v1168_v4 = vpop.f32.mrf.mxu2 }
 0x16b   : > { %v1539_v24 = vadd.f32 %v2751_v23, %v1519_v53  ;;  %v1206_v51 = vadd.f32 %v1168_v4, %v1056_v52  ;;  %v1315_v33 = vpop.f32.mrf.mxu3 }
 0x16c   : > { %v1021_v34 = vpop.f32.mrf.mxu1 }
 0x16d   : > { %v1555_v16 = vmax.f32 %v1539_v24, 0.0  ;;  %v1353_v59 = vadd.f32 %v1315_v33, %v1206_v51  ;;  %v1465_v20 = vpop.f32.mrf.mxu0  ;;  %v1057_v41 = vadd.f32 %v1021_v34, %v2642_v17 }
 0x16f   : > { %1571 = vst [vmem:[%s2758_s13 + $0x20] sm:$0xff] %v1555_v16  ;;  %v1500_v11 = vadd.f32 %v1462_v39, %v1353_v59 }
 0x171   : > { %v1520_v42 = vmul.f32 %v2745_v10, %v1500_v11 }
 0x172   : > { %v1171_v57 = vpop.f32.mrf.mxu2 }
 0x173   : > { %v1540_v60 = vadd.f32 %v2751_v23, %v1520_v42  ;;  %v1207_v0 = vadd.f32 %v1171_v57, %v1057_v41  ;;  %v1318_v1 = vpop.f32.mrf.mxu3 }
 0x174   : > { %v1024_v56 = vpop.f32.mrf.mxu1 }
 0x175   : > { %v1556_v3 = vmax.f32 %v1540_v60, 0.0  ;;  %v1354_v26 = vadd.f32 %v1318_v1, %v1207_v0  ;;  %v1468_v28 = vpop.f32.mrf.mxu0  ;;  %v1058_v18 = vadd.f32 %v1024_v56, %v2653_v30 }
 0x177   : > { %1572 = vst [vmem:[%s2758_s13 + $0x28] sm:$0xff] %v1556_v3  ;;  %v1501_v62 = vadd.f32 %v1465_v20, %v1354_v26 }
 0x179   : > { %v1521_v43 = vmul.f32 %v2745_v10, %v1501_v62 }
 0x17a   : > { %v1174_v44 = vpop.f32.mrf.mxu2 }
 0x17b   : > { %v1541_v17 = vadd.f32 %v2751_v23, %v1521_v43  ;;  %v1208_v63 = vadd.f32 %v1174_v44, %v1058_v18  ;;  %v1321_v35 = vpop.f32.mrf.mxu3 }
 0x17c   : > { %v1027_v12 = vpop.f32.mrf.mxu1 }
 0x17d   : > { %v1557_v36 = vmax.f32 %v1541_v17, 0.0  ;;  %v1355_v2 = vadd.f32 %v1321_v35, %v1208_v63  ;;  %v1471_v22 = vpop.f32.mrf.mxu0  ;;  %v1059_v46 = vadd.f32 %v1027_v12, %v2664_v37 }
 0x17f   : > { %1573 = vst [vmem:[%s2758_s13 + $0x30] sm:$0xff] %v1557_v36  ;;  %v1502_v45 = vadd.f32 %v1468_v28, %v1355_v2 }
 0x181   : > { %v1522_v29 = vmul.f32 %v2745_v10, %v1502_v45 }
 0x182   : > { %v1177_v9 = vpop.f32.mrf.mxu2 }
 0x183   : > { %v1542_v30 = vadd.f32 %v2751_v23, %v1522_v29  ;;  %v1209_v5 = vadd.f32 %v1177_v9, %v1059_v46  ;;  %v1324_v31 = vpop.f32.mrf.mxu3 }
 0x184   : > { %v1030_v21 = vpop.f32.mrf.mxu1 }
 0x185   : > { %v1558_v7 = vmax.f32 %v1542_v30, 0.0  ;;  %v1356_v47 = vadd.f32 %v1324_v31, %v1209_v5  ;;  %v1474_v48 = vpop.f32.mrf.mxu0  ;;  %v1060_v15 = vadd.f32 %v1030_v21, %v2675_v25 }
 0x187   : > { %1574 = vst [vmem:[%s2758_s13 + $0x38] sm:$0xff] %v1558_v7  ;;  %v1503_v38 = vadd.f32 %v1471_v22, %v1356_v47 }
 0x189   : > { %v1523_v54 = vmul.f32 %v2745_v10, %v1503_v38 }
 0x18a   : > { %v1180_v32 = vpop.f32.mrf.mxu2 }
 0x18b   : > { %v1543_v37 = vadd.f32 %v2751_v23, %v1523_v54  ;;  %v1210_v13 = vadd.f32 %v1180_v32, %v1060_v15  ;;  %v1327_v49 = vpop.f32.mrf.mxu3 }
 0x18c   : > { %v1033_v50 = vpop.f32.mrf.mxu1 }
 0x18d   : > { %v1559_v61 = vmax.f32 %v1543_v37, 0.0  ;;  %v1357_v27 = vadd.f32 %v1327_v49, %v1210_v13  ;;  %v1477_v39 = vpop.f32.mrf.mxu0  ;;  %v1061_v52 = vadd.f32 %v1033_v50, %v2686_v40 }
 0x18f   : > { %1575 = vst [vmem:[%s2758_s13 + $0x40] sm:$0xff] %v1559_v61  ;;  %v1504_v19 = vadd.f32 %v1474_v48, %v1357_v27 }
 0x191   : > { %v1524_v53 = vmul.f32 %v2745_v10, %v1504_v19 }
 0x192   : > { %v1183_v4 = vpop.f32.mrf.mxu2 }
 0x193   : > { %v1544_v25 = vadd.f32 %v2751_v23, %v1524_v53  ;;  %v1211_v24 = vadd.f32 %v1183_v4, %v1061_v52  ;;  %v1330_v51 = vpop.f32.mrf.mxu3 }
 0x194   : > { %v1036_v33 = vpop.f32.mrf.mxu1 }
 0x195   : > { %v1560_v34 = vmax.f32 %v1544_v25, 0.0  ;;  %v1358_v16 = vadd.f32 %v1330_v51, %v1211_v24  ;;  %v1480_v59 = vpop.f32.mrf.mxu0  ;;  %v1062_v11 = vadd.f32 %v1036_v33, %v2698_v58 }
 0x197   : > { %1576 = vst [vmem:[%s2758_s13 + $0x48] sm:$0xff] %v1560_v34  ;;  %v1505_v20 = vadd.f32 %v1477_v39, %v1358_v16 }
 0x199   : > { %v1525_v41 = vmul.f32 %v2745_v10, %v1505_v20 }
 0x19a   : > { %v1186_v42 = vpop.f32.mrf.mxu2 }
 0x19b   : > { %v1545_v40 = vadd.f32 %v2751_v23, %v1525_v41  ;;  %v1212_v57 = vadd.f32 %v1186_v42, %v1062_v11  ;;  %v1333_v60 = vpop.f32.mrf.mxu3 }
 0x19c   : > { %v1039_v0 = vpop.f32.mrf.mxu1 }
 0x19d   : > { %v1561_v1 = vmax.f32 %v1545_v40, 0.0  ;;  %v1359_v56 = vadd.f32 %v1333_v60, %v1212_v57  ;;  %v1483_v3 = vpop.f32.mrf.mxu0  ;;  %v1063_v28 = vadd.f32 %v1039_v0, %v2709_v8 }
 0x19f   : > { %1577 = vst [vmem:[%s2758_s13 + $0x50] sm:$0xff] %v1561_v1  ;;  %v1506_v26 = vadd.f32 %v1480_v59, %v1359_v56 }
 0x1a1   : > { %v1526_v62 = vmul.f32 %v2745_v10, %v1506_v26 }
 0x1a2   : > { %v1189_v18 = vpop.f32.mrf.mxu2 }
 0x1a3   : > { %v1546_v58 = vadd.f32 %v2751_v23, %v1526_v62  ;;  %v1213_v43 = vadd.f32 %v1189_v18, %v1063_v28  ;;  %v1336_v44 = vpop.f32.mrf.mxu3 }
 0x1a4   : > { %v1042_v17 = vpop.f32.mrf.mxu1 }
 0x1a5   : > { %v1562_v63 = vmax.f32 %v1546_v58, 0.0  ;;  %v1360_v35 = vadd.f32 %v1336_v44, %v1213_v43  ;;  %v1486_v36 = vpop.f32.mrf.mxu0  ;;  %v1064_v2 = vadd.f32 %v1042_v17, %v2722_v14 }
 0x1a7   : > { %1578 = vst [vmem:[%s2758_s13 + $0x58] sm:$0xff] %v1562_v63  ;;  %v1507_v12 = vadd.f32 %v1483_v3, %v1360_v35 }
 0x1a9   : > { %v1527_v22 = vmul.f32 %v2745_v10, %v1507_v12 }
 0x1aa   : > { %v1192_v45 = vpop.f32.mrf.mxu2 }
 0x1ab   : > { %v1547_v8 = vadd.f32 %v2751_v23, %v1527_v22  ;;  %v1214_v46 = vadd.f32 %v1192_v45, %v1064_v2  ;;  %v1339_v29 = vpop.f32.mrf.mxu3 }
 0x1ac   : > { %v1045_v9 = vpop.f32.mrf.mxu1 }
 0x1ad   : > { %v1563_v30 = vmax.f32 %v1547_v8, 0.0  ;;  %v1361_v5 = vadd.f32 %v1339_v29, %v1214_v46  ;;  %v1065_v21 = vadd.f32 %v1045_v9, %v2732_v55  ;;  %v1489_v47 = vpop.f32.mrf.mxu0 }
 0x1af   : > { %1579 = vst [vmem:[%s2758_s13 + $0x60] sm:$0xff] %v1563_v30  ;;  %v1508_v31 = vadd.f32 %v1486_v36, %v1361_v5 }
 0x1b1   : > { %v1528_v7 = vmul.f32 %v2745_v10, %v1508_v31 }
 0x1b2   : > { %v1195_v14 = vpop.f32.mrf.mxu2 }
 0x1b3   : > { %v1548_v48 = vadd.f32 %v2751_v23, %v1528_v7  ;;  %v1215_v38 = vadd.f32 %v1195_v14, %v1065_v21  ;;  %v1342_v15 = vpop.f32.mrf.mxu3 }
 0x1b4   : > { %v1048_v37 = vpop.f32.mrf.mxu1 }
 0x1b5   : > { %v1564_v54 = vmax.f32 %v1548_v48, 0.0  ;;  %v1362_v32 = vadd.f32 %v1342_v15, %v1215_v38  ;;  %v1066_v55 = vadd.f32 %v1048_v37, %v2739_v6  ;;  %v1492_v19 = vpop.f32.mrf.mxu0 }
 0x1b7   : > { %1580 = vst [vmem:[%s2758_s13 + $0x68] sm:$0xff] %v1564_v54  ;;  %v1509_v13 = vadd.f32 %v1489_v47, %v1362_v32 }
 0x1b9   : > { %v1529_v49 = vmul.f32 %v2745_v10, %v1509_v13 }
 0x1ba   : > { %v1198_v50 = vpop.f32.mrf.mxu2 }
 0x1bb   : > { %v1549_v61 = vadd.f32 %v2751_v23, %v1529_v49  ;;  %v1216_v27 = vadd.f32 %v1198_v50, %v1066_v55  ;;  %v1345_v39 = vpop.f32.mrf.mxu3 }
 0x1bd   : > { %v1565_v52 = vmax.f32 %v1549_v61, 0.0  ;;  %v1363_v53 = vadd.f32 %v1345_v39, %v1216_v27 }
 0x1bf   : > { %1581 = vst [vmem:[%s2758_s13 + $0x70] sm:$0xff] %v1565_v52  ;;  %v1510_v6 = vadd.f32 %v1492_v19, %v1363_v53 }
 0x1c1   : > { %v1530_v4 = vmul.f32 %v2745_v10, %v1510_v6 }
 0x1c3   : > { %v1550_v25 = vadd.f32 %v2751_v23, %v1530_v4 }
 0x1c5   : > { %v1566_v24 = vmax.f32 %v1550_v25, 0.0 }
 0x1c7   : > { %1582 = vst [vmem:[%s2758_s13 + $0x78] sm:$0xff] %v1566_v24 }
 0x1c8   : > { %2063 = shalt.err (!%p2060_p6)
}
 0x1c9   : > { %s2132_s9 = smov 128   ;;  %s2133_s13 = smov 8  }
 0x1ca   : > { %1961 = dma.vmem_to_hbm [thread:$0]  (%p2210_p3), %s1600_s5, 2048, %s1602_s6, %s1584_s8, %s2132_s9, %s2132_s9, %s2133_s13  }
 0x1cb PF: > { %p1967_p7 = scmp.ge.s32.totalorder %s2130_s22, 2  ;;  %s1616_s18 = sand.u32 1, %s2102_s15  }
 0x1cc   : > { %s1617_s19 = scalar_lea.sflag [#allocation3], %s1616_s18 }
 0x1cd   : > { %p1964_p9 = pnand %p1967_p7, %p2219_p8 }
 0x1cf   : > { %p1965_p10 = pneg %p1964_p9 }
 0x1d1   : > { %2097 = dma.done.wait (%p1965_p10), %s1617_s19, 2048  }
 0x1d2   : > { %2099 = vsyncadd (%p1965_p10), %s1617_s19, 4294965248  ;;  %s17_s22 = sadd.s32 1, %s2130_s22   ;;  %s2882_s15 = smov %s2106_s16 }
 0x1d3   : > { %p14_p11 = scmp.ge.s32.totalorder %s17_s22, 6   ;;  %s2883_s16 = smov %s2110_s17 }
 0x1d4   : > { %s2884_s17 = smov %s2228_s7  ;;  %s2885_s18 = smov %s2122_s20 }
 0x1d5   : > { %s2886_s19 = smov %s2126_s21  ;;  %s2887_s20 = smov %s2890_s25 }
 0x1d6   : > { %s2888_s21 = smov %s2894_s26  ;;  %16 = sbr.rel (!%p14_p11) target bundleno = 5 (0x5), region = 82 }
 0x1db   :  { %1623 = vsyncpa [#allocation3], 1 }
 0x1dc   :  { %1625 = vsyncpa [#allocation3 + $0x1], 1 }

</bundles_post_ra>
